<compile_context>
chip_gen: v7x
topology: tpu7x:2x2x1
jax: 0.10.0
libtpu: 0.0.40
codegen_flags: <defaults>
</compile_context>

<pallas_src>
import math
import functools

import jax
import jax.numpy as jnp
from jax.experimental import pallas as pl
from jax.experimental.pallas import tpu as pltpu

_EPS = 1e-5
_PARALLEL_1D = pltpu.CompilerParams(dimension_semantics=("parallel",))


def _row_tile(n_rows: int, cap: int = 256) -> int:
    """Largest multiple-of-8 row tile <= cap that divides n_rows."""
    t = min(cap, n_rows)
    t -= t % 8
    while t > 8 and n_rows % t:
        t -= 8
    return max(t, 8)


def _build_pe_table(max_len: int, d_model: int) -> jnp.ndarray:
    """Sinusoidal table, identical math to the PyTorch PositionalEncoding.__init__."""
    position = jnp.arange(max_len, dtype=jnp.float32)[:, None]
    div_term = jnp.exp(
        jnp.arange(0, d_model, 2, dtype=jnp.float32) * (-math.log(10000.0) / d_model)
    )
    pe = jnp.zeros((max_len, d_model), dtype=jnp.float32)
    pe = pe.at[:, 0::2].set(jnp.sin(position * div_term))
    pe = pe.at[:, 1::2].set(jnp.cos(position * div_term))
    return pe


# ----------------------------------------------------------------------------- kernels


def _embed_posenc_kernel(seed_ref, x_ref, w_ref, b_ref, pe_ref, o_ref, *, p, training, c_in):
    # x_ref: (ts, c_in)  w_ref: (c_in, D)  b_ref: (1, D)  pe_ref: (ts, D)  o_ref: (ts, D)
    x = x_ref[...].astype(jnp.float32)
    w = w_ref[...].astype(jnp.float32)
    y = b_ref[...].astype(jnp.float32) + pe_ref[...].astype(jnp.float32)   # (1,D)+(ts,D)
    # Tiny-K embedding done as broadcast MACs on the VPU (c_in == 2), avoids a K=2 MXU dot.
    for c in range(c_in):
        y = y + x[:, c:c + 1] * w[c:c + 1, :]
    if training and p > 0.0:
        # Inverted dropout with an integer keep-threshold; seed depends on the grid step.
        # TODO(synk): RNG stream differs from torch.nn.Dropout (no bitwise parity possible).
        pltpu.prng_seed(seed_ref[0] + pl.program_id(0))
        bits = pltpu.bitcast(pltpu.prng_random_bits(y.shape), jnp.uint32)
        thresh = jnp.uint32(min(int(round(p * 4294967296.0)), 4294967295))
        y = jnp.where(bits >= thresh, y * jnp.float32(1.0 / (1.0 - p)), jnp.float32(0.0))
    o_ref[...] = y.astype(o_ref.dtype)


def _linear_kernel(x_ref, w_ref, b_ref, o_ref, *, activation):
    y = jnp.dot(x_ref[...], w_ref[...], preferred_element_type=jnp.float32)
    y = y + b_ref[...].astype(jnp.float32)
    if activation == "silu":
        y = y * (1.0 / (1.0 + jnp.exp(-y)))
    o_ref[...] = y.astype(o_ref.dtype)


def _attention_kernel(q_ref, k_ref, v_ref, o_ref, *, scale):
    q = q_ref[0].astype(jnp.float32)          # (S, Dh)
    k = k_ref[0].astype(jnp.float32)
    v = v_ref[0].astype(jnp.float32)
    s = jax.lax.dot_general(q, k, (((1,), (1,)), ((), ())),
                            preferred_element_type=jnp.float32) * scale     # (S, S)
    s = s - jnp.max(s, axis=-1, keepdims=True)
    p = jnp.exp(s)
    p = p / jnp.sum(p, axis=-1, keepdims=True)
    o = jnp.dot(p, v, preferred_element_type=jnp.float32)
    o_ref[0] = o.astype(o_ref.dtype)


def _add_layernorm_kernel(x_ref, r_ref, g_ref, b_ref, o_ref):
    y = x_ref[...].astype(jnp.float32) + r_ref[...].astype(jnp.float32)
    mu = jnp.mean(y, axis=-1, keepdims=True)
    yc = y - mu
    var = jnp.mean(yc * yc, axis=-1, keepdims=True)
    o_ref[...] = (yc * jax.lax.rsqrt(var + _EPS) * g_ref[...] + b_ref[...]).astype(o_ref.dtype)


# --------------------------------------------------------------------- pallas_call builders


@functools.lru_cache(maxsize=None)
def _embed_posenc_call(M, c_in, S, D, ts, p, training, dtype):
    n_pe = S // ts
    pe_map = (lambda i, s: (0, 0)) if n_pe == 1 else (lambda i, s: (i % n_pe, 0))
    kernel = functools.partial(_embed_posenc_kernel, p=p, training=training, c_in=c_in)
    grid_spec = pltpu.PrefetchScalarGridSpec(
        num_scalar_prefetch=1,
        grid=(M // ts,),
        in_specs=[
            pl.BlockSpec((ts, c_in), lambda i, s: (i, 0)),   # white-noise rows
            pl.BlockSpec((c_in, D), lambda i, s: (0, 0)),    # embedding weight
            pl.BlockSpec((1, D), lambda i, s: (0, 0)),       # embedding bias
            pl.BlockSpec((ts, D), pe_map),                   # shared PE rows
        ],
        out_specs=pl.BlockSpec((ts, D), lambda i, s: (i, 0)),
    )
    return jax.jit(pl.pallas_call(
        kernel,
        out_shape=jax.ShapeDtypeStruct((M, D), jnp.dtype(dtype)),
        grid_spec=grid_spec,
        compiler_params=_PARALLEL_1D,
    ))


def embed_posenc(noise_flat, w, b, pe, *, p=0.0, training=False, seed=0):
    M, c_in = noise_flat.shape
    S, D = pe.shape
    ts = _row_tile(S)
    assert S % ts == 0 and M % ts == 0
    fn = _embed_posenc_call(M, c_in, S, D, ts, float(p), bool(training), str(noise_flat.dtype))
    return fn(jnp.array([seed], jnp.int32), noise_flat, w, b, pe.astype(noise_flat.dtype))


@functools.lru_cache(maxsize=None)
def _linear_call(M, K, N, tm, activation, dtype):
    kernel = functools.partial(_linear_kernel, activation=activation)
    return jax.jit(pl.pallas_call(
        kernel,
        out_shape=jax.ShapeDtypeStruct((M, N), jnp.dtype(dtype)),
        grid=(M // tm,),
        in_specs=[pl.BlockSpec((tm, K), lambda i: (i, 0)),
                  pl.BlockSpec((K, N), lambda i: (0, 0)),
                  pl.BlockSpec((1, N), lambda i: (0, 0))],
        out_specs=pl.BlockSpec((tm, N), lambda i: (i, 0)),
        compiler_params=_PARALLEL_1D,
    ))


def linear(x, w, b, *, activation="none"):
    # TODO(synk): K and N are kept as full blocks (d_model / ffn widths are modest here); very
    # large models would add K/N grid axes with an f32 accumulator scratch.
    M, K = x.shape
    N = w.shape[1]
    tm = _row_tile(M)
    return _linear_call(M, K, N, tm, activation, str(x.dtype))(x, w, b)


@functools.lru_cache(maxsize=None)
def _attention_call(BH, S, Dh, dtype):
    kernel = functools.partial(_attention_kernel, scale=1.0 / math.sqrt(Dh))
    spec = pl.BlockSpec((1, S, Dh), lambda i: (i, 0, 0))
    return jax.jit(pl.pallas_call(
        kernel,
        out_shape=jax.ShapeDtypeStruct((BH, S, Dh), jnp.dtype(dtype)),
        grid=(BH,),
        in_specs=[spec, spec, spec],
        out_specs=spec,
        compiler_params=_PARALLEL_1D,
    ))


def attention(q, k, v):
    BH, S, Dh = q.shape
    return _attention_call(BH, S, Dh, str(q.dtype))(q, k, v)


@functools.lru_cache(maxsize=None)
def _add_layernorm_call(M, D, tm, dtype):
    return jax.jit(pl.pallas_call(
        _add_layernorm_kernel,
        out_shape=jax.ShapeDtypeStruct((M, D), jnp.dtype(dtype)),
        grid=(M // tm,),
        in_specs=[pl.BlockSpec((tm, D), lambda i: (i, 0)),
                  pl.BlockSpec((tm, D), lambda i: (i, 0)),
                  pl.BlockSpec((1, D), lambda i: (0, 0)),
                  pl.BlockSpec((1, D), lambda i: (0, 0))],
        out_specs=pl.BlockSpec((tm, D), lambda i: (i, 0)),
        compiler_params=_PARALLEL_1D,
    ))


def add_layernorm(x, r, g, b):
    M, D = x.shape
    tm = _row_tile(M)
    return _add_layernorm_call(M, D, tm, str(x.dtype))(x, r, g, b)


# ----------------------------------------------------------------------------- model


class EncoderOnlyTransformerForNoise:
    """Pallas-TPU equivalent of the PyTorch EncoderOnlyTransformerForNoise forward pass."""

    def __init__(self, n_heads, dropout_encoder, n_encoder_layers, d_model,
                 dim_feedforward_encoder, seq_len=1024, channels_in=2, channels_out=2,
                 batch_first=True, positional_dropout=0.0, param_key=None):
        assert d_model % n_heads == 0 and d_model % 2 == 0
        assert seq_len % 8 == 0, "seq_len must be a multiple of 8 (TPU sublane tiling)"
        self.n_heads = n_heads
        self.n_layers = n_encoder_layers
        self.d_model = d_model
        self.dim_ff = dim_feedforward_encoder
        self.seq_len = seq_len
        self.channels_in = channels_in
        self.channels_out = channels_out
        self.dropout_encoder = float(dropout_encoder)
        self.positional_dropout = float(positional_dropout)
        self.pe = _build_pe_table(seq_len, d_model)  # max_len == seq_len, as in the module
        self.params = self._init_params(param_key if param_key is not None
                                        else jax.random.PRNGKey(0))

    def _init_params(self, key):
        D, F = self.d_model, self.dim_ff
        ks = iter(jax.random.split(key, 4 + 8 * self.n_layers))

        def lin(k, fan_in, fan_out):
            w = jax.random.normal(k, (fan_in, fan_out), jnp.float32) / math.sqrt(fan_in)
            return w, jnp.zeros((1, fan_out), jnp.float32)

        p = {}
        p["w_emb"], p["b_emb"] = lin(next(ks), self.channels_in, D)
        layers = []
        for _ in range(self.n_layers):
            lp = {}
            lp["w_qkv"], lp["b_qkv"] = lin(next(ks), D, 3 * D)
            lp["w_o"], lp["b_o"] = lin(next(ks), D, D)
            lp["w_ff1"], lp["b_ff1"] = lin(next(ks), D, F)
            lp["w_ff2"], lp["b_ff2"] = lin(next(ks), F, D)
            lp["ln1_g"] = jnp.ones((1, D), jnp.float32)
            lp["ln1_b"] = jnp.zeros((1, D), jnp.float32)
            lp["ln2_g"] = jnp.ones((1, D), jnp.float32)
            lp["ln2_b"] = jnp.zeros((1, D), jnp.float32)
            layers.append(lp)
        p["layers"] = layers
        # BatchNorm1d(d_model) parameters and running stats.
        p["bn_gamma"] = jnp.ones((D,), jnp.float32)
        p["bn_beta"] = jnp.zeros((D,), jnp.float32)
        p["bn_mean"] = jnp.zeros((D,), jnp.float32)
        p["bn_var"] = jnp.ones((D,), jnp.float32)
        p["w_out"], p["b_out"] = lin(next(ks), D, self.channels_out)
        return p

    def __call__(self, size_of_batch, num_noise_realisations, *, noise_key,
                 training=False, dropout_seed=0):
        N = size_of_batch * num_noise_realisations
        S, D, H = self.seq_len, self.d_model, self.n_heads
        Dh = D // H
        M = N * S
        p = self.params

        # white_noise = torch.randn(B*R, seq_len, channels_in)
        noise = jax.random.normal(noise_key, (N, S, self.channels_in), jnp.float32)

        # Fused embedding + positional encoding (+ positional dropout) on flattened rows.
        h = embed_posenc(noise.reshape(M, self.channels_in), p["w_emb"], p["b_emb"], self.pe,
                         p=self.positional_dropout, training=training, seed=dropout_seed)

        for lp in p["layers"]:
            qkv = linear(h, lp["w_qkv"], lp["b_qkv"])
            q, k, v = jnp.split(qkv, 3, axis=-1)

            def heads(t):
                return t.reshape(N, S, H, Dh).transpose(0, 2, 1, 3).reshape(N * H, S, Dh)

            a = attention(heads(q), heads(k), heads(v))
            a = a.reshape(N, H, S, Dh).transpose(0, 2, 1, 3).reshape(M, D)
            a = linear(a, lp["w_o"], lp["b_o"])
            # TODO(synk): encoder-internal dropouts (dropout_encoder) are implemented only for
            # eval mode (identity); training-mode masks would need per-layer PRNG plumbing.
            h = add_layernorm(h, a, lp["ln1_g"], lp["ln1_b"])
            ff = linear(h, lp["w_ff1"], lp["b_ff1"], activation="silu")
            ff = linear(ff, lp["w_ff2"], lp["b_ff2"])
            h = add_layernorm(h, ff, lp["ln2_g"], lp["ln2_b"])

        # BatchNorm1d over d_model: per-feature affine is folded into the final linear's weights.
        if training:
            mu = jnp.mean(h, axis=0)
            var = jnp.mean((h - mu) ** 2, axis=0)
        else:
            mu, var = p["bn_mean"], p["bn_var"]
        scale = p["bn_gamma"] * jax.lax.rsqrt(var + _EPS)
        shift = p["bn_beta"] - mu * scale
        w_eff = p["w_out"] * scale[:, None]
        b_eff = p["b_out"] + shift[None, :] @ p["w_out"]

        out = linear(h, w_eff, b_eff)                       # (M, channels_out)
        out = out.reshape(size_of_batch, num_noise_realisations, S, self.channels_out)
        return out.transpose(0, 2, 1, 3)                    # (batch, seq, realisations, c_out)


# ---------------------------------------------------------------------- pure-jnp reference


def _reference_forward(model, size_of_batch, num_noise_realisations, noise, training=False):
    p = model.params
    N, S, _ = noise.shape
    D, H = model.d_model, model.n_heads
    Dh = D // H
    M = N * S

    def layernorm(x, g, b):
        mu = jnp.mean(x, axis=-1, keepdims=True)
        var = jnp.mean((x - mu) ** 2, axis=-1, keepdims=True)
        return (x - mu) * jax.lax.rsqrt(var + _EPS) * g + b

    h = noise.reshape(M, model.channels_in) @ p["w_emb"] + p["b_emb"]
    h = (h.reshape(N, S, D) + model.pe[None]).reshape(M, D)
    for lp in p["layers"]:
        qkv = h @ lp["w_qkv"] + lp["b_qkv"]
        q, k, v = jnp.split(qkv, 3, axis=-1)
        q = q.reshape(N, S, H, Dh).transpose(0, 2, 1, 3)
        k = k.reshape(N, S, H, Dh).transpose(0, 2, 1, 3)
        v = v.reshape(N, S, H, Dh).transpose(0, 2, 1, 3)
        s = jnp.einsum("nhsd,nhtd->nhst", q, k) / math.sqrt(Dh)
        a = jnp.einsum("nhst,nhtd->nhsd", jax.nn.softmax(s, axis=-1), v)
        a = a.transpose(0, 2, 1, 3).reshape(M, D) @ lp["w_o"] + lp["b_o"]
        h = layernorm(h + a, lp["ln1_g"], lp["ln1_b"])
        ff = jax.nn.silu(h @ lp["w_ff1"] + lp["b_ff1"]) @ lp["w_ff2"] + lp["b_ff2"]
        h = layernorm(h + ff, lp["ln2_g"], lp["ln2_b"])
    if training:
        mu = jnp.mean(h, axis=0)
        var = jnp.mean((h - mu) ** 2, axis=0)
    else:
        mu, var = p["bn_mean"], p["bn_var"]
    h = (h - mu) * jax.lax.rsqrt(var + _EPS) * p["bn_gamma"] + p["bn_beta"]
    out = h @ p["w_out"] + p["b_out"]
    out = out.reshape(size_of_batch, num_noise_realisations, S, model.channels_out)
    return out.transpose(0, 2, 1, 3)


if __name__ == "__main__":
    # Small shapes consistent with the module's forward.
    d_model, n_heads, n_layers, dim_ff = 128, 4, 2, 256
    seq_len, channels_in, channels_out = 128, 2, 2
    size_of_batch, num_noise_realisations = 2, 2

    key = jax.random.PRNGKey(0)
    param_key, noise_key = jax.random.split(key)

    model = EncoderOnlyTransformerForNoise(
        n_heads=n_heads, dropout_encoder=0.1, n_encoder_layers=n_layers, d_model=d_model,
        dim_feedforward_encoder=dim_ff, seq_len=seq_len, channels_in=channels_in,
        channels_out=channels_out, positional_dropout=0.0, param_key=param_key)

    out = model(size_of_batch, num_noise_realisations, noise_key=noise_key, training=False)
    out = jax.block_until_ready(out)

    assert out.shape == (size_of_batch, seq_len, num_noise_realisations, channels_out)
    assert bool(jnp.all(jnp.isfinite(out)))

    # Same noise the forward generated internally.
    noise = jax.random.normal(
        noise_key, (size_of_batch * num_noise_realisations, seq_len, channels_in), jnp.float32)

    # Tight-ish check of the fused embed + positional-encoding kernel.
    emb_pallas = embed_posenc(noise.reshape(-1, channels_in), model.params["w_emb"],
                              model.params["b_emb"], model.pe, p=0.0, training=False, seed=0)
    emb_ref = noise.reshape(-1, channels_in) @ model.params["w_emb"] + model.params["b_emb"]
    emb_ref = (emb_ref.reshape(-1, seq_len, d_model) + model.pe[None]).reshape(-1, d_model)
    assert bool(jnp.allclose(emb_pallas, emb_ref, atol=2e-2, rtol=2e-2)), \
        float(jnp.max(jnp.abs(emb_pallas - emb_ref)))

    # End-to-end check against the pure-jnp reference (loose tolerance: MXU precision differs).
    ref = _reference_forward(model, size_of_batch, num_noise_realisations, noise, training=False)
    assert bool(jnp.allclose(out, ref, atol=5e-2, rtol=5e-2)), \
        float(jnp.max(jnp.abs(out - ref)))

    print("KERNEL_OK")
</pallas_src>

<mosaic_0001>
module attributes {stable_mosaic.version = 11 : i64} {
  func.func @_embed_posenc_kernel(%arg0: i32, %arg1: memref<1xi32, #tpu.memory_space<smem>>, %arg2: memref<128x2xf32, #tpu.memory_space<vmem>>, %arg3: memref<2x128xf32, #tpu.memory_space<vmem>>, %arg4: memref<1x128xf32, #tpu.memory_space<vmem>>, %arg5: memref<128x128xf32, #tpu.memory_space<vmem>>, %arg6: memref<128x128xf32, #tpu.memory_space<vmem>>) attributes {dimension_semantics = [#tpu.dimension_semantics<parallel>], iteration_bounds = array<i64: 4>, scalar_prefetch = 1 : i64, scratch_operands = 0 : i64, tpu.core_type = #tpu.core_type<tc>, window_params = [{transform_indices = @transform_0, window_bounds = array<i64: 128, 2>}, {pipeline_mode = #tpu.pipeline_mode<synchronous>, transform_indices = @transform_1, window_bounds = array<i64: 2, 128>}, {pipeline_mode = #tpu.pipeline_mode<synchronous>, transform_indices = @transform_2, window_bounds = array<i64: 1, 128>}, {pipeline_mode = #tpu.pipeline_mode<synchronous>, transform_indices = @transform_3, window_bounds = array<i64: 128, 128>}, {transform_indices = @transform_4, window_bounds = array<i64: 128, 128>}]} {
    %c0 = arith.constant 0 : index
    %c0_0 = arith.constant 0 : index
    %0 = vector.load %arg2[%c0, %c0_0] : memref<128x2xf32, #tpu.memory_space<vmem>>, vector<128x2xf32>
    %c0_1 = arith.constant 0 : index
    %c0_2 = arith.constant 0 : index
    %1 = vector.load %arg3[%c0_1, %c0_2] : memref<2x128xf32, #tpu.memory_space<vmem>>, vector<2x128xf32>
    %c0_3 = arith.constant 0 : index
    %c0_4 = arith.constant 0 : index
    %2 = vector.load %arg4[%c0_3, %c0_4] : memref<1x128xf32, #tpu.memory_space<vmem>>, vector<1x128xf32>
    %c0_5 = arith.constant 0 : index
    %c0_6 = arith.constant 0 : index
    %3 = vector.load %arg5[%c0_5, %c0_6] : memref<128x128xf32, #tpu.memory_space<vmem>>, vector<128x128xf32>
    %4 = vector.broadcast %2 : vector<1x128xf32> to vector<128x128xf32>
    %5 = arith.addf %4, %3 : vector<128x128xf32>
    %6 = vector.extract_strided_slice %0 {offsets = [0, 0], sizes = [128, 1], strides = [1, 1]} : vector<128x2xf32> to vector<128x1xf32>
    %7 = vector.extract_strided_slice %1 {offsets = [0, 0], sizes = [1, 128], strides = [1, 1]} : vector<2x128xf32> to vector<1x128xf32>
    %8 = vector.broadcast %6 : vector<128x1xf32> to vector<128x128xf32>
    %9 = vector.broadcast %7 : vector<1x128xf32> to vector<128x128xf32>
    %10 = arith.mulf %8, %9 : vector<128x128xf32>
    %11 = arith.addf %5, %10 : vector<128x128xf32>
    %12 = vector.extract_strided_slice %0 {offsets = [0, 1], sizes = [128, 1], strides = [1, 1]} : vector<128x2xf32> to vector<128x1xf32>
    %13 = vector.extract_strided_slice %1 {offsets = [1, 0], sizes = [1, 128], strides = [1, 1]} : vector<2x128xf32> to vector<1x128xf32>
    %14 = vector.broadcast %12 : vector<128x1xf32> to vector<128x128xf32>
    %15 = vector.broadcast %13 : vector<1x128xf32> to vector<128x128xf32>
    %16 = arith.mulf %14, %15 : vector<128x128xf32>
    %17 = arith.addf %11, %16 : vector<128x128xf32>
    %c0_7 = arith.constant 0 : index
    %c0_8 = arith.constant 0 : index
    %18 = vector.load %arg6[%c0_7, %c0_8] : memref<128x128xf32, #tpu.memory_space<vmem>>, vector<128x128xf32>
    tpu.vector_store %arg6[%c0_7, %c0_8], %17 {strides = array<i32>} : memref<128x128xf32, #tpu.memory_space<vmem>>, vector<128x128xf32>,
    return
  }
  func.func @transform_0(%arg0: i32, %arg1: memref<1xi32, #tpu.memory_space<smem>>) -> (i32, i32) {
    %c0_i32 = arith.constant 0 : i32
    %c0_i32_0 = arith.constant 0 : i32
    return %arg0, %c0_i32 : i32, i32
  }
  func.func @transform_1(%arg0: i32, %arg1: memref<1xi32, #tpu.memory_space<smem>>) -> (i32, i32) {
    %c0_i32 = arith.constant 0 : i32
    %c0_i32_0 = arith.constant 0 : i32
    %c0_i32_1 = arith.constant 0 : i32
    return %c0_i32, %c0_i32_0 : i32, i32
  }
  func.func @transform_2(%arg0: i32, %arg1: memref<1xi32, #tpu.memory_space<smem>>) -> (i32, i32) {
    %c0_i32 = arith.constant 0 : i32
    %c0_i32_0 = arith.constant 0 : i32
    %c0_i32_1 = arith.constant 0 : i32
    return %c0_i32, %c0_i32_0 : i32, i32
  }
  func.func @transform_3(%arg0: i32, %arg1: memref<1xi32, #tpu.memory_space<smem>>) -> (i32, i32) {
    %c0_i32 = arith.constant 0 : i32
    %c0_i32_0 = arith.constant 0 : i32
    %c0_i32_1 = arith.constant 0 : i32
    return %c0_i32, %c0_i32_0 : i32, i32
  }
  func.func @transform_4(%arg0: i32, %arg1: memref<1xi32, #tpu.memory_space<smem>>) -> (i32, i32) {
    %c0_i32 = arith.constant 0 : i32
    %c0_i32_0 = arith.constant 0 : i32
    return %arg0, %c0_i32 : i32, i32
  }
}

</mosaic_0001>

<bundles_post_ra>
// kernel: tpu_custom_call.1
= control target key start
LH: loop header
LB: loop body
LE: loop exit
PB: predicated region body
PF: predicated region fallthrough
CT: control target
= control target key end

     0   :  { %11 = vsyncpa [#allocation5], 0  ;;  %s988_s0 = inlined_call_operand.<no memory space> [shape: s32[1], index: 0, kind: input, shape index: {}]   ;;  %s989_s1 = inlined_call_operand.vmem [shape: f32[512,2], index: 1, kind: input, shape index: {}]   ;;  %s990_s2 = inlined_call_operand.vmem [shape: f32[2,128], index: 2, kind: input, shape index: {}]   ;;  %s991_s3 = inlined_call_operand.vmem [shape: f32[1,128], index: 3, kind: input, shape index: {}]   ;;  %s992_s4 = inlined_call_operand.vmem [shape: f32[128,128], index: 4, kind: input, shape index: {}]   ;;  %s993_s5 = inlined_call_operand.hbm [shape: f32[512,128], index: 5, kind: output, shape index: {}]  }
   0x1   :  { %13 = vsyncpa [#allocation5 + $0x1], 0  ;;  %s725_s18 = smov 0   ;;  %s727_s0 = smov 0  }
   0x2   :  { %s729_s19 = smov 0   ;;  %s731_s20 = smov 0  }
   0x3 LB: > { %s746_s21 = sadd.s32 4294967295, %s688_s20   ;;  %s565_s22 = sadd.s32 4294967294, %s688_s20   ;;  %s688_s20 = sphi %s731_s20, %s999_s20   ;;  %s684_s19 = sphi %s729_s19, %s998_s19   ;;  %s680_s0 = sphi %s727_s0, %s997_s0   ;;  %s676_s18 = sphi %s725_s18, %s996_s18  }
   0x4   : > { %s750_s23 = sadd.s32 1, %s688_s20   ;;  %s115_s24 = sadd.s32 1, %s684_s19 }
   0x5   : > { %s112_s25 = ssub.s32 %s688_s20, %s750_s23  ;;  %p125_p0 = scmp.ne.s32.totalorder %s684_s19, %s680_s0 }
   0x6   : > { %p113_p1 = scmp.eq.s32.totalorder %s112_s25, 0  ;;  %p126_p2 = scmp.eq.s32.totalorder %s746_s21, 3 }
   0x7   : > { %p131_p3 = scmp.ne.s32.totalorder %s680_s0, %s676_s18  ;;  %p132_p4 = scmp.eq.s32.totalorder %s565_s22, 3 }
   0x8   : > { %s761_s26 = scalar_select %p113_p1, %s684_s19, %s115_s24  }
   0x9   : > { %p763_p5 = por %p126_p2, %p125_p0  ;;  %p767_p6 = por %p132_p4, %p131_p3 }
   0xa   : > { %p568_p7 = scmp.ge.s32.totalorder %s688_s20, 1  ;;  %p168_p8 = scmp.lt.s32.totalorder %s688_s20, 5 }
   0xc   : > { %p169_p9 = pnand %p568_p7, %p168_p8 }
   0xd   : > { %s570_s29 = sshll.u32 (!%p169_p9), %s746_s21, 4  ;;  %v690_v0 = vmov (!%p169_p9), 0   ;;  %v691_v17 = vmov (!%p169_p9), 1   ;;  %v337_v26 = vlaneseq (!%p169_p9)  ;;  %v217_v33 = vld [vmem:[%s990_s2] sm:$0x3] (!%p169_p9)  ;;  %v220_v40 = vld [vmem:[%s992_s4 + $0x8] sm:$0xff] (!%p169_p9) }
   0xe   : > { %172 = sbr.rel (%p169_p9) target bundleno = 233 (0xe9), region = 36  ;;  %623 = vset.pattern.permute.xlu1 (!%p169_p9), %v690_v0  ;;  %622 = vset.pattern.permute.xlu0 (!%p169_p9), %v690_v0  ;;  %p195_p10 = scmp.lt.s32.totalorder (!%p169_p9), %s570_s29, 63  ;;  %v801_v37 = vld [vmem:[%s991_s3] ss:$0 sm:$0xff] (!%p169_p9)  ;;  %v221_v45 = vld [vmem:[%s992_s4 + $0x10] sm:$0xff] (!%p169_p9)  ;;  %v222_v46 = vld [vmem:[%s992_s4 + $0x18] sm:$0xff] (!%p169_p9) }
   0xf   : > { %v338_v29 = vshrl.u32 (!%p169_p9), %v337_v26, 7  ;;  %v219_v38 = vld [vmem:[%s992_s4] sm:$0xff] (!%p169_p9)  ;;  %s191_s17 = sand.u32 (!%p169_p9), 1, %s680_s0   ;;  %v242_v47 = vadd.f32 (!%p169_p9), %v801_v37, %v220_v40  ;;  %v243_v50 = vadd.f32 (!%p169_p9), %v801_v37, %v221_v45  ;;  %v244_v53 = vadd.f32 (!%p169_p9), %v801_v37, %v222_v46  ;;  %v224_v58 = vld [vmem:[%s992_s4 + $0x28] sm:$0xff] (!%p169_p9)  ;;  %v230_v46 = vld [vmem:[%s992_s4 + $0x58] sm:$0xff] (!%p169_p9)  ;;  %s578_s16 = sshll.u32 (!%p169_p9), %s746_s21, 11 }
  0x10   : > { %v241_v43 = vadd.f32 (!%p169_p9), %v801_v37, %v219_v38  ;;  %v223_v59 = vld [vmem:[%s992_s4 + $0x20] sm:$0xff] (!%p169_p9)  ;;  %v246_v0 = vadd.f32 (!%p169_p9), %v801_v37, %v224_v58  ;;  %s947_s21 = scalar_lea.sflag (!%p169_p9), [#allocation5], %s191_s17  ;;  %s692_s6 = smov (!%p169_p9), [#allocation4]  }
  0x11   : > { %v339_v32 = vsub.s32 (!%p169_p9), 0, %v338_v29  ;;  %v439_v39 = vsub.s32 (!%p169_p9), 1, %v338_v29  ;;  %s630_s7 = sshll.u32 (!%p169_p9), %s692_s6, 4  ;;  %s631_s7 = int_to_ptr.vmem [resolvable:$false] %s630_s7 }
  0x13   : > { %v796_v36 = vrot.slane (!%p169_p9), %v217_v33, %v339_v32  ;;  %v824_v49 = vrot.slane (!%p169_p9), %v217_v33, %v439_v39 }
  0x15   : > { %s1001_s29 = smov (!%p195_p10, %s570_s29), 63 }
  0x16   : > { %s571_s30 = sshll.u32 %s1001_s29, 3  ;;  %s939_s29 = scalar_lea.hbm %s993_s5, %s578_s16 }
  0x17   : > { %s198_s8 = scalar_lea.vmem %s989_s1, %s571_s30  ;;  %s569_s30 = sshll.u32 %s191_s17, 7 }
  0x18   : > { %v203_v1 = vld [vmem:[%s198_s8 + $0x10] sm:$0xff]  ;;  %v201_v2 = vld [vmem:[%s198_s8] sm:$0xff]  ;;  %v204_v3 = vld [vmem:[%s198_s8 + $0x18] sm:$0xff]  ;;  %s850_s14 = scalar_lea.vmem [#allocation4], %s569_s30 }
  0x19   : > { %269 = vperm.xlu1 %623, %v203_v1   ;;  %259 = vperm.xlu0 %622, %v201_v2   ;;  %v202_v4 = vld [vmem:[%s198_s8 + $0x8] sm:$0xff]  ;;  %v205_v6 = vld [vmem:[%s198_s8 + $0x20] sm:$0xff]  ;;  %v208_v7 = vld [vmem:[%s198_s8 + $0x38] sm:$0xff]  ;;  %s503_s22 = sshll.u32 %s850_s14, 4  ;;  %s941_s22 = int_to_ptr.vmem [resolvable:$true] %s503_s22 }
  0x1a   : > { %v206_v5 = vld [vmem:[%s198_s8 + $0x28] sm:$0xff]  ;;  %v207_v8 = vld [vmem:[%s198_s8 + $0x30] sm:$0xff]  ;;  %v209_v10 = vld [vmem:[%s198_s8 + $0x40] sm:$0xff]  ;;  %s626_s30 = scalar_lea.vmem %s941_s22, 2048  ;;  %p633_p0 = scmp.lt.s32.totalorder %s941_s22, %s631_s7 }
  0x1b   : > { %v210_v9 = vld [vmem:[%s198_s8 + $0x48] sm:$0xff]  ;;  %v212_v11 = vld [vmem:[%s198_s8 + $0x58] sm:$0xff]  ;;  %v211_v12 = vld [vmem:[%s198_s8 + $0x50] sm:$0xff]  ;;  %p627_p11 = scmp.ne.s32.totalorder %s941_s22, %s626_s30 }
  0x1c   : > { %v214_v13 = vld [vmem:[%s198_s8 + $0x68] sm:$0xff]  ;;  %v213_v14 = vld [vmem:[%s198_s8 + $0x60] sm:$0xff]  ;;  %v216_v15 = vld [vmem:[%s198_s8 + $0x78] sm:$0xff] }
  0x1d   : > { %274 = vperm.xlu1 %623, %v204_v3   ;;  %264 = vperm.xlu0 %622, %v202_v4   ;;  %v215_v16 = vld [vmem:[%s198_s8 + $0x70] sm:$0xff]  ;;  %p628_p12 = pnand %p627_p11, %p763_p5  ;;  %s632_s8 = scalar_lea.vmem %s631_s7, 4096 }
  0x1e   : > { %p634_p1 = scmp.lt.s32.totalorder %s632_s8, %s626_s30 }
  0x1f   : > { %p629_p13 = pneg %p628_p12 }
  0x20   : > { %p635_p2 = por %p634_p1, %p633_p0 }
  0x21   : > { %284 = vperm.xlu1 %623, %v206_v5   ;;  %279 = vperm.xlu0 %622, %v205_v6  }
  0x22   : > { %p636_p3 = pnand %p635_p2, %p629_p13 }
  0x25   : > { %294 = vperm.xlu1 %623, %v208_v7   ;;  %289 = vperm.xlu0 %622, %v207_v8  }
  0x29   : > { %304 = vperm.xlu1 %623, %v210_v9   ;;  %299 = vperm.xlu0 %622, %v209_v10  }
  0x2d   : > { %314 = vperm.xlu1 %623, %v212_v11   ;;  %309 = vperm.xlu0 %622, %v211_v12  }
  0x31   : > { %324 = vperm.xlu1 %623, %v214_v13   ;;  %319 = vperm.xlu0 %622, %v213_v14  }
  0x35   : > { %334 = vperm.xlu1 %623, %v216_v15   ;;  %329 = vperm.xlu0 %622, %v215_v16  }
  0x39   : > { %625 = vset.pattern.permute.xlu1 %v691_v17  ;;  %624 = vset.pattern.permute.xlu0 %v691_v17 }
  0x3a   : > { %378 = vperm.xlu1 %625, %v202_v4   ;;  %374 = vperm.xlu0 %624, %v201_v2   ;;  %v245_v2 = vadd.f32 %v801_v37, %v223_v59  ;;  %v232_v59 = vld [vmem:[%s992_s4 + $0x68] sm:$0xff] }
  0x3e   : > { %382 = vperm.xlu1 %625, %v203_v1   ;;  %386 = vperm.xlu0 %624, %v204_v3  }
  0x42   : > { %390 = vperm.xlu1 %625, %v205_v6   ;;  %394 = vperm.xlu0 %624, %v206_v5  }
  0x46   : > { %398 = vperm.xlu1 %625, %v207_v8   ;;  %402 = vperm.xlu0 %624, %v208_v7   ;;  %v226_v8 = vld [vmem:[%s992_s4 + $0x38] sm:$0xff] }
  0x4a   : > { %406 = vperm.xlu1 %625, %v209_v10   ;;  %410 = vperm.xlu0 %624, %v210_v9   ;;  %v225_v9 = vld [vmem:[%s992_s4 + $0x30] sm:$0xff] }
  0x4b   : > { %v247_v17 = vadd.f32 %v801_v37, %v225_v9 }
  0x4e   : > { %414 = vperm.xlu1 %625, %v211_v12   ;;  %418 = vperm.xlu0 %624, %v212_v11  }
  0x52   : > { %422 = vperm.xlu1 %625, %v213_v14   ;;  %426 = vperm.xlu0 %624, %v214_v13  }
  0x56   : > { %430 = vperm.xlu1 %625, %v215_v16   ;;  %434 = vperm.xlu0 %624, %v216_v15   ;;  %v248_v16 = vadd.f32 %v801_v37, %v226_v8  ;;  %v233_v8 = vld [vmem:[%s992_s4 + $0x70] sm:$0xff] }
  0x98   : > { %v270_v18 = vpop.permute.xlu1 %269  ;;  %v260_v19 = vpop.permute.xlu0 %259 }
  0x99   : > { %v341_v44 = vmul.f32 %v796_v36, %v260_v19  ;;  %v343_v51 = vmul.f32 %v796_v36, %v270_v18 }
  0x9b   : > { %v357_v52 = vadd.f32 %v341_v44, %v241_v43  ;;  %v359_v6 = vadd.f32 %v343_v51, %v243_v50 }
  0x9c   : > { %v275_v20 = vpop.permute.xlu1 %274  ;;  %v265_v21 = vpop.permute.xlu0 %264 }
  0x9d   : > { %v342_v48 = vmul.f32 %v796_v36, %v265_v21  ;;  %v344_v56 = vmul.f32 %v796_v36, %v275_v20 }
  0x9f   : > { %v358_v57 = vadd.f32 %v342_v48, %v242_v47  ;;  %v360_v7 = vadd.f32 %v344_v56, %v244_v53  ;;  %v229_v47 = vld [vmem:[%s992_s4 + $0x50] sm:$0xff]  ;;  %v252_v53 = vadd.f32 %v801_v37, %v230_v46 }
  0xa0   : > { %v285_v22 = vpop.permute.xlu1 %284  ;;  %v280_v23 = vpop.permute.xlu0 %279 }
  0xa1   : > { %v346_v1 = vmul.f32 %v796_v36, %v285_v22  ;;  %v345_v3 = vmul.f32 %v796_v36, %v280_v23  ;;  %v228_v22 = vld [vmem:[%s992_s4 + $0x48] sm:$0xff]  ;;  %v227_v23 = vld [vmem:[%s992_s4 + $0x40] sm:$0xff] }
  0xa2   : > { %v249_v38 = vadd.f32 %v801_v37, %v227_v23 }
  0xa3   : > { %v362_v14 = vadd.f32 %v346_v1, %v246_v0  ;;  %v361_v15 = vadd.f32 %v345_v3, %v245_v2 }
  0xa4   : > { %v777_v24 = vpop.permute.xlu1 %294  ;;  %v779_v25 = vpop.permute.xlu0 %289 }
  0xa5   : > { %v348_v20 = vmul.f32 %v796_v36, %v777_v24  ;;  %v347_v21 = vmul.f32 %v796_v36, %v779_v25  ;;  %v250_v25 = vadd.f32 %v801_v37, %v228_v22 }
  0xa7   : > { %v364_v44 = vadd.f32 %v348_v20, %v248_v16  ;;  %v363_v45 = vadd.f32 %v347_v21, %v247_v17 }
  0xa8   : > { %v781_v27 = vpop.permute.xlu1 %304  ;;  %v783_v28 = vpop.permute.xlu0 %299 }
  0xa9   : > { %v350_v33 = vmul.f32 %v796_v36, %v781_v27  ;;  %v349_v39 = vmul.f32 %v796_v36, %v783_v28 }
  0xab   : > { %v366_v51 = vadd.f32 %v350_v33, %v250_v25 }
  0xac   : > { %v785_v30 = vpop.permute.xlu1 %314  ;;  %v787_v31 = vpop.permute.xlu0 %309 }
  0xad   : > { %v351_v58 = vmul.f32 %v796_v36, %v787_v31  ;;  %v254_v31 = vadd.f32 %v801_v37, %v232_v59 }
  0xb0   : > { %v792_v34 = vpop.permute.xlu1 %324  ;;  %v794_v35 = vpop.permute.xlu0 %319 }
  0xb1   : > { %v354_v0 = vmul.f32 %v796_v36, %v792_v34  ;;  %v353_v2 = vmul.f32 %v796_v36, %v794_v35 }
  0xb4   : > { %v809_v41 = vpop.permute.xlu1 %334  ;;  %v811_v42 = vpop.permute.xlu0 %329 }
  0xb5   : > { %v356_v17 = vmul.f32 %v796_v36, %v809_v41 }
  0xb9   : > { %v379_v54 = vpop.permute.xlu1 %378  ;;  %v375_v55 = vpop.permute.xlu0 %374 }
  0xba   : > { %v442_v60 = vmul.f32 %v824_v49, %v379_v54  ;;  %v441_v61 = vmul.f32 %v824_v49, %v375_v55  ;;  %v251_v54 = vadd.f32 %v801_v37, %v229_v47 }
  0xbc   : > { %v458_v62 = vadd.f32 %v442_v60, %v358_v57  ;;  %v457_v63 = vadd.f32 %v441_v61, %v357_v52  ;;  %v365_v52 = vadd.f32 %v349_v39, %v249_v38  ;;  %v352_v57 = vmul.f32 %v796_v36, %v785_v30  ;;  %v231_v60 = vld [vmem:[%s992_s4 + $0x60] sm:$0xff] }
  0xbd   : > { %v383_v4 = vpop.permute.xlu1 %382  ;;  %v387_v5 = vpop.permute.xlu0 %386  ;;  %v253_v1 = vadd.f32 %v801_v37, %v231_v60 }
  0xbe   : > { %474 = vst [vmem:[%s850_s14 + $0x8] sm:$0xff] %v458_v62  ;;  %473 = vst [vmem:[%s850_s14] sm:$0xff] %v457_v63  ;;  %v443_v10 = vmul.f32 %v824_v49, %v383_v4  ;;  %v444_v11 = vmul.f32 %v824_v49, %v387_v5  ;;  %v368_v5 = vadd.f32 %v352_v57, %v252_v53 }
  0xc0   : > { %v459_v12 = vadd.f32 %v443_v10, %v359_v6  ;;  %v460_v13 = vadd.f32 %v444_v11, %v360_v7  ;;  %v367_v6 = vadd.f32 %v351_v58, %v251_v54  ;;  %v234_v7 = vld [vmem:[%s992_s4 + $0x78] sm:$0xff]  ;;  %v370_v11 = vadd.f32 %v354_v0, %v254_v31 }
  0xc1   : > { %v391_v18 = vpop.permute.xlu1 %390  ;;  %v395_v19 = vpop.permute.xlu0 %394 }
  0xc2   : > { %475 = vst [vmem:[%s850_s14 + $0x10] sm:$0xff] %v459_v12  ;;  %476 = vst [vmem:[%s850_s14 + $0x18] sm:$0xff] %v460_v13  ;;  %v445_v26 = vmul.f32 %v824_v49, %v391_v18  ;;  %v446_v29 = vmul.f32 %v824_v49, %v395_v19  ;;  %v369_v12 = vadd.f32 %v353_v2, %v253_v1 }
  0xc3   : > { %v256_v13 = vadd.f32 %v801_v37, %v234_v7  ;;  %v355_v18 = vmul.f32 %v796_v36, %v811_v42 }
  0xc4   : > { %v461_v24 = vadd.f32 %v445_v26, %v361_v15  ;;  %v462_v32 = vadd.f32 %v446_v29, %v362_v14  ;;  %v255_v14 = vadd.f32 %v801_v37, %v233_v8 }
  0xc5   : > { %v399_v40 = vpop.permute.xlu1 %398  ;;  %v403_v43 = vpop.permute.xlu0 %402  ;;  %v372_v41 = vadd.f32 %v356_v17, %v256_v13 }
  0xc6   : > { %477 = vst [vmem:[%s850_s14 + $0x20] sm:$0xff] %v461_v24  ;;  %478 = vst [vmem:[%s850_s14 + $0x28] sm:$0xff] %v462_v32  ;;  %v447_v27 = vmul.f32 %v824_v49, %v399_v40  ;;  %v448_v28 = vmul.f32 %v824_v49, %v403_v43  ;;  %v371_v26 = vadd.f32 %v355_v18, %v255_v14 }
  0xc8   : > { %v463_v48 = vadd.f32 %v447_v27, %v363_v45  ;;  %v464_v50 = vadd.f32 %v448_v28, %v364_v44 }
  0xc9   : > { %v407_v55 = vpop.permute.xlu1 %406  ;;  %v411_v56 = vpop.permute.xlu0 %410 }
  0xca   : > { %479 = vst [vmem:[%s850_s14 + $0x30] sm:$0xff] %v463_v48  ;;  %480 = vst [vmem:[%s850_s14 + $0x38] sm:$0xff] %v464_v50  ;;  %v449_v61 = vmul.f32 %v824_v49, %v407_v55  ;;  %v450_v62 = vmul.f32 %v824_v49, %v411_v56 }
  0xcc   : > { %v465_v30 = vadd.f32 %v449_v61, %v365_v52  ;;  %v466_v63 = vadd.f32 %v450_v62, %v366_v51 }
  0xcd   : > { %v415_v3 = vpop.permute.xlu1 %414  ;;  %v419_v4 = vpop.permute.xlu0 %418 }
  0xce   : > { %481 = vst [vmem:[%s850_s14 + $0x40] sm:$0xff] %v465_v30  ;;  %482 = vst [vmem:[%s850_s14 + $0x48] sm:$0xff] %v466_v63  ;;  %v451_v34 = vmul.f32 %v824_v49, %v415_v3  ;;  %v452_v35 = vmul.f32 %v824_v49, %v419_v4 }
  0xd0   : > { %v467_v9 = vadd.f32 %v451_v34, %v367_v6  ;;  %v468_v10 = vadd.f32 %v452_v35, %v368_v5 }
  0xd1   : > { %v423_v15 = vpop.permute.xlu1 %422  ;;  %v427_v16 = vpop.permute.xlu0 %426 }
  0xd2   : > { %483 = vst [vmem:[%s850_s14 + $0x50] sm:$0xff] %v467_v9  ;;  %484 = vst [vmem:[%s850_s14 + $0x58] sm:$0xff] %v468_v10  ;;  %v453_v19 = vmul.f32 %v824_v49, %v423_v15  ;;  %v454_v20 = vmul.f32 %v824_v49, %v427_v16 }
  0xd4   : > { %v469_v21 = vadd.f32 %v453_v19, %v369_v12  ;;  %v470_v22 = vadd.f32 %v454_v20, %v370_v11 }
  0xd5   : > { %v431_v37 = vpop.permute.xlu1 %430  ;;  %v435_v23 = vpop.permute.xlu0 %434 }
  0xd6   : > { %485 = vst [vmem:[%s850_s14 + $0x60] sm:$0xff] %v469_v21  ;;  %486 = vst [vmem:[%s850_s14 + $0x68] sm:$0xff] %v470_v22  ;;  %v455_v36 = vmul.f32 %v824_v49, %v431_v37  ;;  %v456_v42 = vmul.f32 %v824_v49, %v435_v23 }
  0xd8   : > { %v471_v29 = vadd.f32 %v455_v36, %v371_v26  ;;  %v472_v24 = vadd.f32 %v456_v42, %v372_v41 }
  0xda   : > { %487 = vst [vmem:[%s850_s14 + $0x70] sm:$0xff] %v471_v29  ;;  %488 = vst [vmem:[%s850_s14 + $0x78] sm:$0xff] %v472_v24 }
  0xdb   : > { %639 = shalt.err (!%p636_p3)
}
  0xdc   : > { %s640_s17 = scalar_lea.hbm %s939_s29, 2048  ;;  %s644_s10 = scalar_lea.hbm %s993_s5, 8192 }
  0xdd   : > { %p641_p4 = scmp.ne.s32.totalorder %s939_s29, %s640_s17  ;;  %p645_p9 = scmp.lt.u32.totalorder %s939_s29, %s993_s5 }
  0xde   : > { %p646_p10 = scmp.lt.u32.totalorder %s644_s10, %s640_s17  ;;  %p648_p12 = scmp.lt.u32.totalorder %s640_s17, %s939_s29 }
  0xdf   : > { %p642_p7 = pnand %p641_p4, %p763_p5 }
  0xe0   : > { %p647_p11 = por %p646_p10, %p645_p9 }
  0xe1   : > { %p643_p8 = pneg %p642_p7 }
  0xe2   : > { %p649_p13 = por %p648_p12, %p647_p11 }
  0xe4   : > { %p650_p0 = pnand %p649_p13, %p643_p8 }
  0xe6   : > { %653 = shalt.err (!%p650_p0)
}
  0xe7   : > { %s693_s13 = smov 128   ;;  %s694_s15 = smov 8  }
  0xe8   : > { %579 = dma.vmem_to_hbm [thread:$0]  (%p763_p5), %s941_s22, 2048, %s939_s29, %s947_s21, %s693_s13, %s693_s13, %s694_s15  }
  0xe9 PF: > { %p585_p1 = scmp.ge.s32.totalorder %s688_s20, 2  ;;  %s518_s16 = sand.u32 1, %s676_s18  }
  0xea   : > { %s519_s24 = scalar_lea.sflag [#allocation5], %s518_s16 }
  0xeb   : > { %p582_p2 = pnand %p585_p1, %p767_p6 }
  0xed   : > { %671 = dma.done.wait (!%p582_p2), %s519_s24, 2048  }
  0xee   : > { %673 = vsyncadd (!%p582_p2), %s519_s24, 4294965248  ;;  %p16_p3 = scmp.ge.s32.totalorder %s750_s23, 6   ;;  %s996_s18 = smov %s680_s0 }
  0xef   : > { %s997_s0 = smov %s684_s19  ;;  %s998_s19 = smov %s761_s26 }
  0xf0   : > { %s999_s20 = smov %s750_s23  ;;  %18 = sbr.rel (!%p16_p3) target bundleno = 3 (0x3), region = 71 }
  0xf7   :  { %524 = vsyncpa [#allocation5], 1 }
  0xf8   :  { %526 = vsyncpa [#allocation5 + $0x1], 1 }

</bundles_post_ra>
